<compile_context>
chip_gen: v5e
topology: v5e:2x2
jax: 0.10.0
libtpu: 0.0.40
codegen_flags: <defaults>
</compile_context>

<pallas_src>
import functools

import jax
import jax.numpy as jnp
from jax.experimental import pallas as pl
from jax.experimental.pallas import tpu as pltpu

LANES = 128          # lane width
SUBLANES = 8         # sublane tile
MAX_ROW_TILE = 4096  # 4096 x 128 x 4B = 2 MiB per f32 input tile
MAX_PARTITIONS = 2   # v7x has 2 TensorCores; harmless elsewhere


def _wbce_kernel(x_ref, y_ref, w_ref, num_ref, den_ref, acc_num, acc_den,
                 *, rows_valid, blocks_per_part):
    p = pl.program_id(0)
    k = pl.program_id(1)
    row_tile = x_ref.shape[0]

    @pl.when(k == 0)
    def _():
        acc_num[...] = jnp.zeros_like(acc_num)
        acc_den[...] = jnp.zeros_like(acc_den)

    x = x_ref[...].astype(jnp.float32)
    gt = y_ref[...].astype(jnp.float32)
    w = w_ref[...].astype(jnp.float32)

    # Stable BCE-with-logits, identical to the PyTorch expression.
    loss = jnp.maximum(x, 0.0) - x * gt + jnp.log1p(jnp.exp(-jnp.abs(x)))
    num = loss * w

    # Global (unclamped) block index; used both for the edge-block test and
    # to mask rows beyond the valid range (ragged tail + clamped duplicate
    # blocks of the last partition).
    gb = p * blocks_per_part + k
    row0 = gb * row_tile
    is_full = (row0 + row_tile) <= rows_valid

    @pl.when(is_full)
    def _():
        acc_num[...] += num.reshape(row_tile // 8, 8, 128).sum(axis=0)
        acc_den[...] += w.reshape(row_tile // 8, 8, 128).sum(axis=0)

    @pl.when(jnp.logical_not(is_full))
    def _():
        rid = row0 + jax.lax.broadcasted_iota(jnp.int32, (row_tile, LANES), 0)
        valid = rid < rows_valid
        nm = jnp.where(valid, num, 0.0)
        wm = jnp.where(valid, w, 0.0)
        acc_num[...] += nm.reshape(row_tile // 8, 8, 128).sum(axis=0)
        acc_den[...] += wm.reshape(row_tile // 8, 8, 128).sum(axis=0)

    @pl.when(k == pl.num_programs(1) - 1)
    def _():
        num_ref[...] = acc_num[...].reshape(1, SUBLANES, LANES)
        den_ref[...] = acc_den[...].reshape(1, SUBLANES, LANES)


def weighted_bce_loss_2d(logits, labels, weights):
    """Pallas TPU implementation of WeightedBCELoss2d.forward."""
    x = jnp.ravel(logits)      # keep native dtype in HBM; cast in-kernel
    y = jnp.ravel(labels)
    w = jnp.ravel(weights)

    n = x.shape[0]
    chunk = SUBLANES * LANES   # 1024: keeps rows a multiple of 8
    n_pad = ((n + chunk - 1) // chunk) * chunk
    if n_pad != n:
        # Small alignment pad only when needed; padded weights are zero so
        # padded elements contribute nothing to numerator or denominator.
        pad = n_pad - n
        x = jnp.pad(x, (0, pad))
        y = jnp.pad(y, (0, pad))
        w = jnp.pad(w, (0, pad))

    rows = n_pad // LANES
    x2 = x.reshape(rows, LANES)
    y2 = y.reshape(rows, LANES)
    w2 = w.reshape(rows, LANES)

    row_tile = min(MAX_ROW_TILE, rows)          # multiple of 8, <= rows
    nb = (rows + row_tile - 1) // row_tile      # total row blocks
    p_parts = min(MAX_PARTITIONS, nb)           # parallel partitions
    k_steps = (nb + p_parts - 1) // p_parts     # sequential steps / partition

    def in_map(p, k):
        # Clamp so the auto-DMA always stays in bounds; fully out-of-range
        # steps are masked to zero inside the kernel.
        return (jnp.minimum(p * k_steps + k, nb - 1), 0)

    tile_spec = pl.BlockSpec((row_tile, LANES), in_map)
    part_spec = pl.BlockSpec((1, SUBLANES, LANES), lambda p, k: (p, 0, 0))

    kernel = functools.partial(
        _wbce_kernel,
        rows_valid=rows,
        blocks_per_part=k_steps,
    )

    num_parts, den_parts = pl.pallas_call(
        kernel,
        out_shape=(
            jax.ShapeDtypeStruct((p_parts, SUBLANES, LANES), jnp.float32),
            jax.ShapeDtypeStruct((p_parts, SUBLANES, LANES), jnp.float32),
        ),
        grid_spec=pltpu.PrefetchScalarGridSpec(
            num_scalar_prefetch=0,
            grid=(p_parts, k_steps),
            in_specs=[tile_spec, tile_spec, tile_spec],
            out_specs=(part_spec, part_spec),
            scratch_shapes=[
                pltpu.VMEM((SUBLANES, LANES), jnp.float32),
                pltpu.VMEM((SUBLANES, LANES), jnp.float32),
            ],
        ),
        compiler_params=pltpu.CompilerParams(
            dimension_semantics=("parallel", "arbitrary"),
            vmem_limit_bytes=32 * 1024 * 1024,
        ),
    )(x2, y2, w2)

    # Final tiny cross-partition / cross-lane reduction in plain JAX.
    return jnp.sum(num_parts) / jnp.sum(den_parts)


def _reference(logits, labels, weights):
    x = jnp.ravel(logits).astype(jnp.float32)
    y = jnp.ravel(labels).astype(jnp.float32)
    w = jnp.ravel(weights).astype(jnp.float32)
    loss = jnp.maximum(x, 0.0) - x * y + jnp.log1p(jnp.exp(-jnp.abs(x)))
    return jnp.sum(loss * w) / jnp.sum(w)


if __name__ == "__main__":
    key = jax.random.PRNGKey(0)

    # Primary test: NCHW, matching the PyTorch convention.
    k1, k2, k3, key = jax.random.split(key, 4)
    B, C, H, W = 2, 4, 16, 16
    logits = jax.random.normal(k1, (B, C, H, W), dtype=jnp.float32) * 2.0
    labels = (jax.random.uniform(k2, (B, C, H, W)) > 0.5).astype(jnp.float32)
    weights = jax.random.uniform(k3, (B, C, H, W), dtype=jnp.float32) + 0.1

    out = jax.block_until_ready(weighted_bce_loss_2d(logits, labels, weights))
    ref = jax.block_until_ready(_reference(logits, labels, weights))
    assert jnp.allclose(out, ref, rtol=1e-5, atol=1e-5), (out, ref)

    # Secondary test: non-lane-aligned element count (exercises alignment pad).
    k1, k2, k3, key = jax.random.split(key, 4)
    shp = (2, 3, 20, 20)  # 2400 elements, not a multiple of 1024
    logits2 = jax.random.normal(k1, shp, dtype=jnp.float32) * 3.0
    labels2 = (jax.random.uniform(k2, shp) > 0.5).astype(jnp.float32)
    weights2 = jax.random.uniform(k3, shp, dtype=jnp.float32)

    out2 = jax.block_until_ready(weighted_bce_loss_2d(logits2, labels2, weights2))
    ref2 = jax.block_until_ready(_reference(logits2, labels2, weights2))
    assert jnp.allclose(out2, ref2, rtol=1e-5, atol=1e-5), (out2, ref2)

    print("KERNEL_OK")
</pallas_src>

<mosaic_0001>
module attributes {stable_mosaic.version = 11 : i64} {
  func.func @_wbce_kernel(%arg0: i32, %arg1: i32, %arg2: memref<16x128xf32, #tpu.memory_space<vmem>>, %arg3: memref<16x128xf32, #tpu.memory_space<vmem>>, %arg4: memref<16x128xf32, #tpu.memory_space<vmem>>, %arg5: memref<1x8x128xf32, #tpu.memory_space<vmem>>, %arg6: memref<1x8x128xf32, #tpu.memory_space<vmem>>, %arg7: memref<8x128xf32, #tpu.memory_space<vmem>>, %arg8: memref<8x128xf32, #tpu.memory_space<vmem>>) attributes {dimension_semantics = [#tpu.dimension_semantics<parallel>, #tpu.dimension_semantics<arbitrary>], iteration_bounds = array<i64: 1, 1>, scalar_prefetch = 0 : i64, scratch_operands = 2 : i64, tpu.core_type = #tpu.core_type<tc>, window_params = [{transform_indices = @transform_0, window_bounds = array<i64: 16, 128>}, {transform_indices = @transform_1, window_bounds = array<i64: 16, 128>}, {transform_indices = @transform_2, window_bounds = array<i64: 16, 128>}, {transform_indices = @transform_3, window_bounds = array<i64: 1, 8, 128>}, {transform_indices = @transform_4, window_bounds = array<i64: 1, 8, 128>}]} {
    %c0_i32 = arith.constant 0 : i32
    %0 = arith.cmpi eq, %arg1, %c0_i32 : i32
    %1 = arith.extui %0 : i1 to i32
    %c0_i32_0 = arith.constant 0 : i32
    %2 = arith.cmpi ne, %1, %c0_i32_0 : i32
    scf.if %2 {
      %cst_13 = arith.constant 0.000000e+00 : f32
      %30 = vector.broadcast %cst_13 : f32 to vector<8x128xf32>
      %c0_14 = arith.constant 0 : index
      %c0_15 = arith.constant 0 : index
      %31 = vector.load %arg7[%c0_14, %c0_15] : memref<8x128xf32, #tpu.memory_space<vmem>>, vector<8x128xf32>
      tpu.vector_store %arg7[%c0_14, %c0_15], %30 {strides = array<i32>} : memref<8x128xf32, #tpu.memory_space<vmem>>, vector<8x128xf32>,
      %cst_16 = arith.constant 0.000000e+00 : f32
      %32 = vector.broadcast %cst_16 : f32 to vector<8x128xf32>
      %c0_17 = arith.constant 0 : index
      %c0_18 = arith.constant 0 : index
      %33 = vector.load %arg8[%c0_17, %c0_18] : memref<8x128xf32, #tpu.memory_space<vmem>>, vector<8x128xf32>
      tpu.vector_store %arg8[%c0_17, %c0_18], %32 {strides = array<i32>} : memref<8x128xf32, #tpu.memory_space<vmem>>, vector<8x128xf32>,
    } else {
    }
    %c0 = arith.constant 0 : index
    %c0_1 = arith.constant 0 : index
    %3 = vector.load %arg2[%c0, %c0_1] : memref<16x128xf32, #tpu.memory_space<vmem>>, vector<16x128xf32>
    %c0_2 = arith.constant 0 : index
    %c0_3 = arith.constant 0 : index
    %4 = vector.load %arg3[%c0_2, %c0_3] : memref<16x128xf32, #tpu.memory_space<vmem>>, vector<16x128xf32>
    %c0_4 = arith.constant 0 : index
    %c0_5 = arith.constant 0 : index
    %5 = vector.load %arg4[%c0_4, %c0_5] : memref<16x128xf32, #tpu.memory_space<vmem>>, vector<16x128xf32>
    %cst = arith.constant 0.000000e+00 : f32
    %6 = vector.broadcast %cst : f32 to vector<16x128xf32>
    %7 = arith.maximumf %3, %6 : vector<16x128xf32>
    %8 = arith.mulf %3, %4 : vector<16x128xf32>
    %9 = arith.subf %7, %8 : vector<16x128xf32>
    %10 = math.absf %3 : vector<16x128xf32>
    %cst_6 = arith.constant 0.000000e+00 : f32
    %11 = vector.broadcast %cst_6 : f32 to vector<16x128xf32>
    %12 = arith.subf %11, %10 : vector<16x128xf32>
    %13 = math.exp %12 : vector<16x128xf32>
    %14 = math.log1p %13 : vector<16x128xf32>
    %15 = arith.addf %9, %14 : vector<16x128xf32>
    %16 = arith.mulf %15, %5 : vector<16x128xf32>
    %c1_i32 = arith.constant 1 : i32
    %17 = arith.muli %arg0, %c1_i32 : i32
    %18 = arith.addi %17, %arg1 : i32
    %c16_i32 = arith.constant 16 : i32
    %19 = arith.muli %18, %c16_i32 : i32
    %c16_i32_7 = arith.constant 16 : i32
    %20 = arith.addi %19, %c16_i32_7 : i32
    %c16_i32_8 = arith.constant 16 : i32
    %21 = arith.cmpi sle, %20, %c16_i32_8 : i32
    %22 = arith.extui %21 : i1 to i32
    %c0_i32_9 = arith.constant 0 : i32
    %23 = arith.cmpi ne, %22, %c0_i32_9 : i32
    scf.if %23 {
      %c0_13 = arith.constant 0 : index
      %c0_14 = arith.constant 0 : index
      %30 = vector.load %arg7[%c0_13, %c0_14] : memref<8x128xf32, #tpu.memory_space<vmem>>, vector<8x128xf32>
      %31 = vector.shape_cast %16 : vector<16x128xf32> to vector<2x8x128xf32>
      %cst_15 = arith.constant dense<0.000000e+00> : vector<8x128xf32>
      %32 = vector.multi_reduction <add>, %31, %cst_15 [0] : vector<2x8x128xf32> to vector<8x128xf32>
      %33 = arith.addf %30, %32 : vector<8x128xf32>
      %c0_16 = arith.constant 0 : index
      %c0_17 = arith.constant 0 : index
      %34 = vector.load %arg7[%c0_16, %c0_17] : memref<8x128xf32, #tpu.memory_space<vmem>>, vector<8x128xf32>
      tpu.vector_store %arg7[%c0_16, %c0_17], %33 {strides = array<i32>} : memref<8x128xf32, #tpu.memory_space<vmem>>, vector<8x128xf32>,
      %c0_18 = arith.constant 0 : index
      %c0_19 = arith.constant 0 : index
      %35 = vector.load %arg8[%c0_18, %c0_19] : memref<8x128xf32, #tpu.memory_space<vmem>>, vector<8x128xf32>
      %36 = vector.shape_cast %5 : vector<16x128xf32> to vector<2x8x128xf32>
      %cst_20 = arith.constant dense<0.000000e+00> : vector<8x128xf32>
      %37 = vector.multi_reduction <add>, %36, %cst_20 [0] : vector<2x8x128xf32> to vector<8x128xf32>
      %38 = arith.addf %35, %37 : vector<8x128xf32>
      %c0_21 = arith.constant 0 : index
      %c0_22 = arith.constant 0 : index
      %39 = vector.load %arg8[%c0_21, %c0_22] : memref<8x128xf32, #tpu.memory_space<vmem>>, vector<8x128xf32>
      tpu.vector_store %arg8[%c0_21, %c0_22], %38 {strides = array<i32>} : memref<8x128xf32, #tpu.memory_space<vmem>>, vector<8x128xf32>,
    } else {
    }
    %true = arith.constant true
    %24 = arith.xori %21, %true : i1
    %25 = arith.extui %24 : i1 to i32
    %c0_i32_10 = arith.constant 0 : i32
    %26 = arith.cmpi ne, %25, %c0_i32_10 : i32
    scf.if %26 {
      %30 = tpu.iota {dimensions = array<i32: 0>} : vector<16x128xi32>
      %31 = vector.broadcast %19 : i32 to vector<16x128xi32>
      %32 = arith.addi %31, %30 : vector<16x128xi32>
      %c16_i32_13 = arith.constant 16 : i32
      %33 = vector.broadcast %c16_i32_13 : i32 to vector<16x128xi32>
      %34 = arith.cmpi slt, %32, %33 : vector<16x128xi32>
      %cst_14 = arith.constant 0.000000e+00 : f32
      %35 = vector.broadcast %cst_14 : f32 to vector<16x128xf32>
      %36 = arith.select %34, %16, %35 : vector<16x128xi1>, vector<16x128xf32>
      %cst_15 = arith.constant 0.000000e+00 : f32
      %37 = vector.broadcast %cst_15 : f32 to vector<16x128xf32>
      %38 = arith.select %34, %5, %37 : vector<16x128xi1>, vector<16x128xf32>
      %c0_16 = arith.constant 0 : index
      %c0_17 = arith.constant 0 : index
      %39 = vector.load %arg7[%c0_16, %c0_17] : memref<8x128xf32, #tpu.memory_space<vmem>>, vector<8x128xf32>
      %40 = vector.shape_cast %36 : vector<16x128xf32> to vector<2x8x128xf32>
      %cst_18 = arith.constant dense<0.000000e+00> : vector<8x128xf32>
      %41 = vector.multi_reduction <add>, %40, %cst_18 [0] : vector<2x8x128xf32> to vector<8x128xf32>
      %42 = arith.addf %39, %41 : vector<8x128xf32>
      %c0_19 = arith.constant 0 : index
      %c0_20 = arith.constant 0 : index
      %43 = vector.load %arg7[%c0_19, %c0_20] : memref<8x128xf32, #tpu.memory_space<vmem>>, vector<8x128xf32>
      tpu.vector_store %arg7[%c0_19, %c0_20], %42 {strides = array<i32>} : memref<8x128xf32, #tpu.memory_space<vmem>>, vector<8x128xf32>,
      %c0_21 = arith.constant 0 : index
      %c0_22 = arith.constant 0 : index
      %44 = vector.load %arg8[%c0_21, %c0_22] : memref<8x128xf32, #tpu.memory_space<vmem>>, vector<8x128xf32>
      %45 = vector.shape_cast %38 : vector<16x128xf32> to vector<2x8x128xf32>
      %cst_23 = arith.constant dense<0.000000e+00> : vector<8x128xf32>
      %46 = vector.multi_reduction <add>, %45, %cst_23 [0] : vector<2x8x128xf32> to vector<8x128xf32>
      %47 = arith.addf %44, %46 : vector<8x128xf32>
      %c0_24 = arith.constant 0 : index
      %c0_25 = arith.constant 0 : index
      %48 = vector.load %arg8[%c0_24, %c0_25] : memref<8x128xf32, #tpu.memory_space<vmem>>, vector<8x128xf32>
      tpu.vector_store %arg8[%c0_24, %c0_25], %47 {strides = array<i32>} : memref<8x128xf32, #tpu.memory_space<vmem>>, vector<8x128xf32>,
    } else {
    }
    %c0_i32_11 = arith.constant 0 : i32
    %27 = arith.cmpi eq, %arg1, %c0_i32_11 : i32
    %28 = arith.extui %27 : i1 to i32
    %c0_i32_12 = arith.constant 0 : i32
    %29 = arith.cmpi ne, %28, %c0_i32_12 : i32
    scf.if %29 {
      %c0_13 = arith.constant 0 : index
      %c0_14 = arith.constant 0 : index
      %30 = vector.load %arg7[%c0_13, %c0_14] : memref<8x128xf32, #tpu.memory_space<vmem>>, vector<8x128xf32>
      %31 = vector.shape_cast %30 : vector<8x128xf32> to vector<1x8x128xf32>
      %c0_15 = arith.constant 0 : index
      %c0_16 = arith.constant 0 : index
      %c0_17 = arith.constant 0 : index
      %32 = vector.load %arg5[%c0_15, %c0_16, %c0_17] : memref<1x8x128xf32, #tpu.memory_space<vmem>>, vector<1x8x128xf32>
      tpu.vector_store %arg5[%c0_15, %c0_16, %c0_17], %31 {strides = array<i32>} : memref<1x8x128xf32, #tpu.memory_space<vmem>>, vector<1x8x128xf32>,
      %c0_18 = arith.constant 0 : index
      %c0_19 = arith.constant 0 : index
      %33 = vector.load %arg8[%c0_18, %c0_19] : memref<8x128xf32, #tpu.memory_space<vmem>>, vector<8x128xf32>
      %34 = vector.shape_cast %33 : vector<8x128xf32> to vector<1x8x128xf32>
      %c0_20 = arith.constant 0 : index
      %c0_21 = arith.constant 0 : index
      %c0_22 = arith.constant 0 : index
      %35 = vector.load %arg6[%c0_20, %c0_21, %c0_22] : memref<1x8x128xf32, #tpu.memory_space<vmem>>, vector<1x8x128xf32>
      tpu.vector_store %arg6[%c0_20, %c0_21, %c0_22], %34 {strides = array<i32>} : memref<1x8x128xf32, #tpu.memory_space<vmem>>, vector<1x8x128xf32>,
    } else {
    }
    return
  }
  func.func @transform_0(%arg0: i32, %arg1: i32) -> (i32, i32) {
    %c1_i32 = arith.constant 1 : i32
    %0 = arith.muli %arg0, %c1_i32 : i32
    %1 = arith.addi %0, %arg1 : i32
    %c0_i32 = arith.constant 0 : i32
    %2 = arith.minsi %1, %c0_i32 : i32
    %c0_i32_0 = arith.constant 0 : i32
    %c0_i32_1 = arith.constant 0 : i32
    return %2, %c0_i32_0 : i32, i32
  }
  func.func @transform_1(%arg0: i32, %arg1: i32) -> (i32, i32) {
    %c1_i32 = arith.constant 1 : i32
    %0 = arith.muli %arg0, %c1_i32 : i32
    %1 = arith.addi %0, %arg1 : i32
    %c0_i32 = arith.constant 0 : i32
    %2 = arith.minsi %1, %c0_i32 : i32
    %c0_i32_0 = arith.constant 0 : i32
    %c0_i32_1 = arith.constant 0 : i32
    return %2, %c0_i32_0 : i32, i32
  }
  func.func @transform_2(%arg0: i32, %arg1: i32) -> (i32, i32) {
    %c1_i32 = arith.constant 1 : i32
    %0 = arith.muli %arg0, %c1_i32 : i32
    %1 = arith.addi %0, %arg1 : i32
    %c0_i32 = arith.constant 0 : i32
    %2 = arith.minsi %1, %c0_i32 : i32
    %c0_i32_0 = arith.constant 0 : i32
    %c0_i32_1 = arith.constant 0 : i32
    return %2, %c0_i32_0 : i32, i32
  }
  func.func @transform_3(%arg0: i32, %arg1: i32) -> (i32, i32, i32) {
    %c0_i32 = arith.constant 0 : i32
    %c0_i32_0 = arith.constant 0 : i32
    %c0_i32_1 = arith.constant 0 : i32
    return %arg0, %c0_i32, %c0_i32_0 : i32, i32, i32
  }
  func.func @transform_4(%arg0: i32, %arg1: i32) -> (i32, i32, i32) {
    %c0_i32 = arith.constant 0 : i32
    %c0_i32_0 = arith.constant 0 : i32
    %c0_i32_1 = arith.constant 0 : i32
    return %arg0, %c0_i32, %c0_i32_0 : i32, i32, i32
  }
}

</mosaic_0001>

<bundles_post_ra>
// kernel: tpu_custom_call.1
= control target key start
LH: loop header
LB: loop body
LE: loop exit
PB: predicated region body
PF: predicated region fallthrough
CT: control target
= control target key end

     0   :  { %10 = vsyncpa [#allocation5], 0  ;;  %s419_s0 = inlined_call_operand.hbm [shape: f32[16,128], index: 0, kind: input, shape index: {}]   ;;  %s420_s1 = inlined_call_operand.hbm [shape: f32[16,128], index: 1, kind: input, shape index: {}]   ;;  %s421_s2 = inlined_call_operand.hbm [shape: f32[16,128], index: 2, kind: input, shape index: {}]   ;;  %s422_s3 = inlined_call_operand.hbm [shape: f32[1,8,128], index: 3, kind: output, shape index: {0}]   ;;  %s423_s4 = inlined_call_operand.hbm [shape: f32[1,8,128], index: 4, kind: output, shape index: {1}]  }
   0x1   :  { %11 = vsyncpa [#allocation8], 0 }
   0x2   :  { %12 = vsyncpa [#allocation6], 0 }
   0x3   :  { %13 = vsyncpa [#allocation12], 0  ;;  %s43_s17 = sshll.u32 %s420_s1, 4  ;;  %s372_s18 = smov [#allocation7]   ;;  %s44_s17 = int_to_ptr.hbm [resolvable:$true] %s43_s17 }
   0x4   :  { %s45_s19 = sshll.u32 %s372_s18, 4  ;;  %s24_s22 = sshll.u32 %s419_s0, 4  ;;  %s46_s19 = int_to_ptr.vmem [resolvable:$true] %s45_s19  ;;  %s25_s22 = int_to_ptr.hbm [resolvable:$true] %s24_s22 }
   0x5   :  { %s373_s23 = smov 128   ;;  %s374_s24 = smov 8  }
   0x6   :  { %51 = dma.hbm_to_vmem [thread:$0]  %s44_s17, 256, %s46_s19, [#allocation8], %s373_s23, %s373_s23, %s374_s24  }
   0x7   :  { %s375_s25 = smov [#allocation4]   ;;  %s62_s29 = sshll.u32 %s421_s2, 4  ;;  %s63_s29 = int_to_ptr.hbm [resolvable:$true] %s62_s29 }
   0x8   :  { %s26_s26 = sshll.u32 %s375_s25, 4  ;;  %s376_s1 = smov [#allocation9]   ;;  %s27_s26 = int_to_ptr.vmem [resolvable:$true] %s26_s26 }
   0x9   :  { %32 = dma.hbm_to_vmem [thread:$0]  %s25_s22, 256, %s27_s26, [#allocation5], %s373_s23, %s373_s23, %s374_s24  }
   0xa   :  { %s64_s30 = sshll.u32 %s376_s1, 4  ;;  %s65_s30 = int_to_ptr.vmem [resolvable:$true] %s64_s30 }
   0xb   :  { %70 = dma.hbm_to_vmem [thread:$0]  %s63_s29, 256, %s65_s30, [#allocation8], %s373_s23, %s373_s23, %s374_s24  }
   0xc   :  { %364 = dma.done.wait [#allocation5], 256  }
   0xd   :  { %365 = vsyncadd [#allocation5], 4294967040 }
   0xe   :  { %366 = dma.done.wait [#allocation8], 512  }
   0xf   :  { %367 = vsyncadd [#allocation8], 4294966784  ;;  %s377_s0 = smov [#allocation11]   ;;  %s207_s8 = sshll.u32 %s423_s4, 4  ;;  %v101_v0 = vld [vmem:[#allocation4] sm:$0xff]  ;;  %v102_v1 = vld [vmem:[#allocation4 + $0x8] sm:$0xff]  ;;  %s208_s8 = int_to_ptr.hbm [resolvable:$true] %s207_s8 }
  0x10   :  { %s205_s5 = sshll.u32 %s377_s0, 4  ;;  %v105_v2 = vld [vmem:[#allocation9] sm:$0xff]  ;;  %v106_v3 = vld [vmem:[#allocation9 + $0x8] sm:$0xff]  ;;  %v113_v4 = vand.u32 2147483647, %v101_v0  ;;  %v103_v15 = vld [vmem:[#allocation7] sm:$0xff]  ;;  %s206_s5 = int_to_ptr.vmem [resolvable:$true] %s205_s5 }
  0x11   :  { %v114_v5 = vand.u32 2147483647, %v102_v1  ;;  %v155_v6 = vadd.f32 %v106_v3, %v105_v2  ;;  %v104_v18 = vld [vmem:[#allocation7 + $0x8] sm:$0xff]  ;;  %v107_v20 = vmax.f32 %v101_v0, 0.0  ;;  %v109_v21 = vmul.f32 %v103_v15, %v101_v0  ;;  %s378_s2 = smov [#allocation10]   ;;  %s196_s11 = sshll.u32 %s422_s3, 4  ;;  %s197_s11 = int_to_ptr.hbm [resolvable:$true] %s196_s11 }
  0x12   :  { %v115_v7 = vsub.f32 0.0, %v113_v4  ;;  %v108_v24 = vmax.f32 %v102_v1, 0.0  ;;  %v110_v25 = vmul.f32 %v104_v18, %v102_v1  ;;  %s194_s4 = sshll.u32 %s378_s2, 4  ;;  %s195_s4 = int_to_ptr.vmem [resolvable:$true] %s194_s4 }
  0x13   :  { %v116_v8 = vsub.f32 0.0, %v114_v5  ;;  %188 = vst [vmem:[#allocation11] sm:$0xff] %v155_v6  ;;  %v111_v29 = vsub.f32 %v107_v20, %v109_v21 }
  0x14   :  { %210 = dma.vmem_to_hbm [thread:$0]  %s206_s5, 128, %s208_s8, [#allocation12]   ;;  %v117_v9 = vmul.f32 1.442695, %v115_v7  ;;  %v112_v32 = vsub.f32 %v108_v24, %v110_v25 }
  0x15   :  { %v119_v10 = vmul.f32 1.442695, %v116_v8 }
  0x16   :  { %236 = vpow2.f32 %v117_v9 }
  0x17   :  { %238 = vpow2.f32 %v119_v10 }
  0x1c   :  { %v237_v11 = vpop.eup %236 }
  0x1d   :  { %v239_v12 = vpop.eup %238  ;;  %v121_v13 = vadd.f32 1.0, %v237_v11  ;;  %v124_v14 = vmul.f32 -0.5, %v237_v11  ;;  %v127_v22 = vand.u32 2147483647, %v237_v11 }
  0x1e   :  { %v130_v16 = vadd.f32 1.0, %v239_v12  ;;  %v133_v17 = vmul.f32 -0.5, %v239_v12  ;;  %v136_v26 = vand.u32 2147483647, %v239_v12 }
  0x1f   :  { %240 = vlog2.f32 %v121_v13  ;;  %v125_v19 = vadd.f32 1.0, %v124_v14  ;;  %vm128_vm0 = vcmp.lt.f32.partialorder %v127_v22, 0.0004427343 }
  0x20   :  { %242 = vlog2.f32 %v130_v16  ;;  %v134_v23 = vadd.f32 1.0, %v133_v17  ;;  %vm137_vm1 = vcmp.lt.f32.partialorder %v136_v26, 0.0004427343 }
  0x21   :  { %v126_v27 = vmul.f32 %v237_v11, %v125_v19 }
  0x22   :  { %v135_v30 = vmul.f32 %v239_v12, %v134_v23 }
  0x25   :  { %v241_v28 = vpop.eup %240 }
  0x26   :  { %v243_v31 = vpop.eup %242  ;;  %v123_v33 = vmul.f32 0.6931472, %v241_v28 }
  0x27   :  { %v132_v34 = vmul.f32 0.6931472, %v243_v31 }
  0x28   :  { %v129_v35 = vsel %vm128_vm0, %v126_v27, %v123_v33 }
  0x29   :  { %v138_v36 = vsel %vm137_vm1, %v135_v30, %v132_v34  ;;  %v139_v37 = vadd.f32 %v129_v35, %v111_v29 }
  0x2a   :  { %v140_v38 = vadd.f32 %v138_v36, %v112_v32 }
  0x2b   :  { %v141_v39 = vmul.f32 %v139_v37, %v105_v2 }
  0x2c   :  { %v142_v40 = vmul.f32 %v140_v38, %v106_v3 }
  0x2e   :  { %v151_v41 = vadd.f32 %v142_v40, %v141_v39 }
  0x30   :  { %186 = vst [vmem:[#allocation10] sm:$0xff] %v151_v41 }
  0x31   :  { %199 = dma.vmem_to_hbm [thread:$0]  %s195_s4, 128, %s197_s11, [#allocation6]  }
  0x32   :  { %368 = dma.done.wait [#allocation6], 128  }
  0x33   :  { %369 = vsyncadd [#allocation6], 4294967168 }
  0x34   :  { %370 = dma.done.wait [#allocation12], 128  }
  0x35   :  { %371 = vsyncadd [#allocation12], 4294967168 }
  0x36   :  { %219 = vsyncpa [#allocation5], 1 }
  0x37   :  { %220 = vsyncpa [#allocation8], 1 }
  0x38   :  { %221 = vsyncpa [#allocation6], 1 }
  0x39   :  { %222 = vsyncpa [#allocation12], 1 }

</bundles_post_ra>
